<compile_context>
chip_gen: v6e
topology: v6e:2x2x1
jax: 0.10.0
libtpu: 0.0.40
codegen_flags: <defaults>
</compile_context>

<pallas_src>
import functools
import math

import jax
import jax.numpy as jnp
from jax.experimental import pallas as pl
from jax.experimental.pallas import tpu as pltpu


def _round_up(x, m):
    return ((x + m - 1) // m) * m


def _l2_normalize(x, axis, eps=1e-12):
    n = jnp.sqrt(jnp.sum(x * x, axis=axis, keepdims=True))
    return x / jnp.maximum(n, eps)


def _fused_nce_kernel(q_ref, k_ref, queue_ref, o_ref,
                      qn_ref, lp_ref, m_ref, s_ref,
                      *, inv_t, n_valid, n_pad, n_terms):
    """One (queue-group, K-tile) grid step of the fused MoCo InfoNCE loss.

    q_ref     (R, C)   f32   stacked, zero-padded query embeddings (R = n_terms*n_pad)
    k_ref     (R, C)   f32   matching key embeddings (positives)
    queue_ref (C, TK)  bf16  current tile of this group's negative queue
    o_ref     (8, 128) f32   per-group output tile; row t, lane 0 = mean loss of term t
    qn_ref    (R, C)   bf16  scratch: normalized queries pre-scaled by 1/T
    lp_ref    (R, 1)   f32   scratch: positive logit per row (already / T)
    m_ref     (R, 1)   f32   scratch: running max of logits
    s_ref     (R, 1)   f32   scratch: running sum of exp(logit - m)
    """
    kk = pl.program_id(1)

    @pl.when(kk == 0)
    def _init():
        q = q_ref[...]
        k = k_ref[...]
        eps = 1e-12
        # torch.nn.functional.normalize: x / max(||x||, eps) == x * rsqrt(max(||x||^2, eps^2))
        qn = q * jax.lax.rsqrt(jnp.maximum(jnp.sum(q * q, axis=1, keepdims=True), eps * eps))
        kn = k * jax.lax.rsqrt(jnp.maximum(jnp.sum(k * k, axis=1, keepdims=True), eps * eps))
        qn_scaled = qn * inv_t                                        # fold 1/T into LHS once
        lp = jnp.sum(qn_scaled * kn, axis=1, keepdims=True)           # positive logit / T
        qn_ref[...] = qn_scaled.astype(qn_ref.dtype)
        lp_ref[...] = lp
        m_ref[...] = lp                 # running max starts at the positive logit
        s_ref[...] = jnp.ones_like(lp)  # exp(lp - m) == 1

    # Negative logits for this queue tile (MXU: bf16 x bf16 -> f32 accumulation).
    l_neg = jnp.dot(qn_ref[...], queue_ref[...], preferred_element_type=jnp.float32)

    # Online logsumexp update.
    m_prev = m_ref[...]
    m_new = jnp.maximum(m_prev, jnp.max(l_neg, axis=1, keepdims=True))
    s_ref[...] = (s_ref[...] * jnp.exp(m_prev - m_new)
                  + jnp.sum(jnp.exp(l_neg - m_new), axis=1, keepdims=True))
    m_ref[...] = m_new

    @pl.when(kk == pl.num_programs(1) - 1)
    def _finalize():
        # Per-row cross-entropy with label 0: logsumexp(all logits) - l_pos.
        loss_rows = jnp.log(s_ref[...]) + m_ref[...] - lp_ref[...]    # (R, 1)
        row_ids = jax.lax.broadcasted_iota(jnp.int32, (8, 128), 0)
        tile = jnp.zeros((8, 128), jnp.float32)
        for t in range(n_terms):                                      # n_terms <= 8, static
            term = jnp.sum(loss_rows[t * n_pad:t * n_pad + n_valid, :]) * (1.0 / n_valid)
            tile = jnp.where(row_ids == t, term, tile)
        o_ref[...] = tile                                             # full, unmasked store


def fused_moco_losses(groups, queues, temperature, tk=None):
    """Fused MoCo InfoNCE losses.

    groups: length-G list; groups[g] is a list of (query, key) pairs, each (N, C),
            all sharing the negative queue queues[g].
    queues: length-G list of (C, K) negative queues (used as bfloat16).
    Returns a (G, P) f32 array of mean cross-entropy losses (label = 0).
    """
    G = len(groups)
    P = len(groups[0])
    assert all(len(g) == P for g in groups) and 1 <= P <= 8
    N, C = groups[0][0][0].shape
    K = queues[0].shape[1]
    n_pad = _round_up(N, 8)
    R = P * n_pad

    def stack(group, which):
        mats = []
        for pair in group:
            x = pair[which].astype(jnp.float32)
            if n_pad != N:
                x = jnp.pad(x, ((0, n_pad - N), (0, 0)))
            mats.append(x)
        return jnp.concatenate(mats, axis=0)                          # (R, C)

    q_all = jnp.stack([stack(g, 0) for g in groups])                  # (G, R, C) f32
    k_all = jnp.stack([stack(g, 1) for g in groups])                  # (G, R, C) f32
    queue_all = jnp.stack([jnp.asarray(q, jnp.bfloat16) for q in queues])  # (G, C, K) bf16

    if tk is None:
        # Largest multiple of 128 that divides K, capped at 4096 lanes.  Even at C=256
        # that is ~2 MiB of queue tile with double buffering — comfortably inside the
        # default scoped-VMEM limit on v5e/v6e/v7x, while keeping grid-step overhead
        # (~0.35 us/step) small at large K.
        tk = 128 * math.gcd(K // 128, 32) if K % 128 == 0 else K
    assert K % tk == 0

    kern = functools.partial(_fused_nce_kernel, inv_t=1.0 / float(temperature),
                             n_valid=N, n_pad=n_pad, n_terms=P)

    out = pl.pallas_call(
        kern,
        out_shape=jax.ShapeDtypeStruct((G, 8, 128), jnp.float32),
        grid_spec=pltpu.PrefetchScalarGridSpec(
            num_scalar_prefetch=0,
            grid=(G, K // tk),
            in_specs=[
                pl.BlockSpec((None, R, C), lambda g, kk: (g, 0, 0)),
                pl.BlockSpec((None, R, C), lambda g, kk: (g, 0, 0)),
                pl.BlockSpec((None, C, tk), lambda g, kk: (g, 0, kk)),
            ],
            out_specs=pl.BlockSpec((None, 8, 128), lambda g, kk: (g, 0, 0)),
            scratch_shapes=[
                pltpu.VMEM((R, C), jnp.bfloat16),   # qn * (1/T)
                pltpu.VMEM((R, 1), jnp.float32),    # l_pos
                pltpu.VMEM((R, 1), jnp.float32),    # running max
                pltpu.VMEM((R, 1), jnp.float32),    # running sum_exp
            ],
        ),
        compiler_params=pltpu.CompilerParams(
            dimension_semantics=("parallel", "arbitrary")),
    )(q_all, k_all, queue_all)

    return out[:, :P, 0]                                              # (G, P)


class NCELossMocoJax:
    """JAX/Pallas port of NCELossMoco (forward pass)."""

    def __init__(self, config, key):
        assert config["NCE_LOSS"]["LOSS_TYPE"] in ["cross_entropy"]
        self.loss_type = config["NCE_LOSS"]["LOSS_TYPE"]
        self.loss_list = config["LOSS_TYPE"].split(",")
        self.other_queue = config["OTHER_INPUT"]
        self.npid0_w = float(config["within_format_weight0"])
        self.npid1_w = float(config["within_format_weight1"])
        self.cmc0_w = float(config["across_format_weight0"])
        self.cmc1_w = float(config["across_format_weight1"])
        self.K = int(config["NCE_LOSS"]["NUM_NEGATIVES"])
        self.dim = int(config["NCE_LOSS"]["EMBEDDING_DIM"])
        self.T = float(config["NCE_LOSS"]["TEMPERATURE"])
        self.normalize_embedding = config["NCE_LOSS"]["NORM_EMBEDDING"]

        k1, k2 = jax.random.split(key)
        # register_buffer('queue', randn(dim, K)); normalize(dim=0).  Stored in bf16:
        # it holds unit-norm vectors, and bf16 halves the dominant HBM stream.
        self.queue = _l2_normalize(
            jax.random.normal(k1, (self.dim, self.K), jnp.float32), axis=0
        ).astype(jnp.bfloat16)
        self.queue_ptr = 0
        if self.other_queue:
            self.queue_other = _l2_normalize(
                jax.random.normal(k2, (self.dim, self.K), jnp.float32), axis=0
            ).astype(jnp.bfloat16)
            self.queue_other_ptr = 0

    def _dequeue_and_enqueue(self, keys, okeys=None):
        # TODO(synk): single-process only (no distributed all_gather on the keys).
        batch = keys.shape[0]
        assert self.K % batch == 0
        self.queue = jax.lax.dynamic_update_slice(
            self.queue, jnp.transpose(keys).astype(self.queue.dtype), (0, self.queue_ptr)
        )
        self.queue_ptr = (self.queue_ptr + batch) % self.K
        if self.other_queue:
            self.queue_other = jax.lax.dynamic_update_slice(
                self.queue_other, jnp.transpose(okeys).astype(self.queue_other.dtype),
                (0, self.queue_other_ptr)
            )
            self.queue_other_ptr = (self.queue_other_ptr + batch) % self.K

    def forward(self, output):
        assert isinstance(output, list)
        assert self.normalize_embedding  # kernel normalizes internally

        if self.other_queue:
            # Group 0 (self.queue):       NPID (q0 vs k1), CMC i2p (q2 vs k1)
            # Group 1 (self.queue_other): CMC p2i (q0 vs k3), NPID-other (q2 vs k3)
            groups = [
                [(output[0], output[1]), (output[2], output[1])],
                [(output[0], output[3]), (output[2], output[3])],
            ]
            losses = fused_moco_losses(groups, [self.queue, self.queue_other], self.T)
            loss_npid = losses[0, 0]
            loss_cmc_i2p = losses[0, 1]
            loss_cmc_p2i = losses[1, 0]
            loss_npid_other = losses[1, 1]
        else:
            losses = fused_moco_losses([[(output[0], output[1])]], [self.queue], self.T)
            loss_npid = losses[0, 0]
            loss_npid_other = jnp.float32(0.0)
            loss_cmc_p2i = jnp.float32(0.0)
            loss_cmc_i2p = jnp.float32(0.0)

        # Buffer update uses the normalized keys (as in the PyTorch module), after logits.
        n2 = _l2_normalize(output[1], axis=1)
        if self.other_queue:
            n4 = _l2_normalize(output[3], axis=1)
            self._dequeue_and_enqueue(n2, okeys=n4)
        else:
            self._dequeue_and_enqueue(n2)

        if self.other_queue:
            curr_loss = jnp.float32(0.0)
            for ltype in self.loss_list:
                if ltype == "CMC":
                    curr_loss = curr_loss + loss_cmc_p2i * self.cmc0_w + loss_cmc_i2p * self.cmc1_w
                elif ltype == "NPID":
                    curr_loss = curr_loss + loss_npid * self.npid0_w
                    curr_loss = curr_loss + loss_npid_other * self.npid1_w
        else:
            curr_loss = loss_npid * self.npid0_w

        return curr_loss, [loss_npid, loss_npid_other, loss_cmc_p2i, loss_cmc_i2p]


def _reference_loss(q, k, queue_f32, T):
    """Pure-JAX reference of one InfoNCE term (for sanity check)."""
    qn = _l2_normalize(q, axis=1)
    kn = _l2_normalize(k, axis=1)
    l_pos = jnp.sum(qn * kn, axis=1, keepdims=True)
    l_neg = qn @ queue_f32
    logits = jnp.concatenate([l_pos, l_neg], axis=1) / T
    lse = jax.scipy.special.logsumexp(logits, axis=1)
    return jnp.mean(lse - logits[:, 0])


if __name__ == "__main__":
    # Small demo shapes: batch=8, embedding dim=32, num negatives=384 (K % N == 0,
    # and K/128 = 3 queue tiles so the online logsumexp path is exercised).
    N, C, K = 8, 32, 384

    config = {
        "NCE_LOSS": {
            "LOSS_TYPE": "cross_entropy",
            "NUM_NEGATIVES": K,
            "EMBEDDING_DIM": C,
            "TEMPERATURE": 0.07,
            "NORM_EMBEDDING": True,
        },
        "LOSS_TYPE": "CMC,NPID",
        "OTHER_INPUT": True,
        "within_format_weight0": 1.0,
        "within_format_weight1": 1.0,
        "across_format_weight0": 0.5,
        "across_format_weight1": 0.5,
    }

    key = jax.random.PRNGKey(0)
    k_mod, k_in = jax.random.split(key)
    criterion = NCELossMocoJax(config, k_mod)

    ks = jax.random.split(k_in, 4)
    outputs = [jax.random.normal(ks[i], (N, C), jnp.float32) for i in range(4)]

    # Snapshot the pre-enqueue queues (as f32) for the pure-JAX reference check.
    queue0_before = criterion.queue.astype(jnp.float32)
    queue1_before = criterion.queue_other.astype(jnp.float32)

    loss, parts = criterion.forward(outputs)
    loss = jax.block_until_ready(loss)
    parts = [jax.block_until_ready(p) for p in parts]

    T = config["NCE_LOSS"]["TEMPERATURE"]
    refs = {
        "npid": _reference_loss(outputs[0], outputs[1], queue0_before, T),
        "npid_other": _reference_loss(outputs[2], outputs[3], queue1_before, T),
        "cmc_p2i": _reference_loss(outputs[0], outputs[3], queue1_before, T),
        "cmc_i2p": _reference_loss(outputs[2], outputs[1], queue0_before, T),
    }
    got = dict(zip(["npid", "npid_other", "cmc_p2i", "cmc_i2p"], parts))
    for name, ref in refs.items():
        assert jnp.allclose(got[name], ref, rtol=2e-2, atol=5e-2), (name, got[name], ref)

    ref_total = (refs["cmc_p2i"] * config["across_format_weight0"]
                 + refs["cmc_i2p"] * config["across_format_weight1"]
                 + refs["npid"] * config["within_format_weight0"]
                 + refs["npid_other"] * config["within_format_weight1"])
    assert jnp.allclose(loss, ref_total, rtol=2e-2, atol=1e-1), (loss, ref_total)
    assert bool(jnp.isfinite(loss))

    print("KERNEL_OK")
</pallas_src>

<mosaic_0001>
module attributes {stable_mosaic.version = 11 : i64} {
  func.func @_fused_nce_kernel(%arg0: i32, %arg1: i32, %arg2: memref<1x16x32xf32, #tpu.memory_space<vmem>>, %arg3: memref<1x16x32xf32, #tpu.memory_space<vmem>>, %arg4: memref<1x32x128xbf16, #tpu.memory_space<vmem>>, %arg5: memref<1x8x128xf32, #tpu.memory_space<vmem>>, %arg6: memref<16x32xbf16, #tpu.memory_space<vmem>>, %arg7: memref<16x1xf32, #tpu.memory_space<vmem>>, %arg8: memref<16x1xf32, #tpu.memory_space<vmem>>, %arg9: memref<16x1xf32, #tpu.memory_space<vmem>>) attributes {dimension_semantics = [#tpu.dimension_semantics<parallel>, #tpu.dimension_semantics<arbitrary>], iteration_bounds = array<i64: 2, 3>, scalar_prefetch = 0 : i64, scratch_operands = 4 : i64, tpu.core_type = #tpu.core_type<tc>, window_params = [{transform_indices = @transform_0, window_bounds = array<i64: 1, 16, 32>}, {transform_indices = @transform_1, window_bounds = array<i64: 1, 16, 32>}, {transform_indices = @transform_2, window_bounds = array<i64: 1, 32, 128>}, {transform_indices = @transform_3, window_bounds = array<i64: 1, 8, 128>}]} {
    %c0_i32 = arith.constant 0 : i32
    %0 = arith.cmpi eq, %arg1, %c0_i32 : i32
    %1 = arith.extui %0 : i1 to i32
    %c0_i32_0 = arith.constant 0 : i32
    %2 = arith.cmpi ne, %1, %c0_i32_0 : i32
    scf.if %2 {
      %c0_16 = arith.constant 0 : index
      %c0_17 = arith.constant 0 : index
      %c0_18 = arith.constant 0 : index
      %26 = vector.load %arg2[%c0_16, %c0_17, %c0_18] : memref<1x16x32xf32, #tpu.memory_space<vmem>>, vector<1x16x32xf32>
      %27 = vector.shape_cast %26 : vector<1x16x32xf32> to vector<16x32xf32>
      %c0_19 = arith.constant 0 : index
      %c0_20 = arith.constant 0 : index
      %c0_21 = arith.constant 0 : index
      %28 = vector.load %arg3[%c0_19, %c0_20, %c0_21] : memref<1x16x32xf32, #tpu.memory_space<vmem>>, vector<1x16x32xf32>
      %29 = vector.shape_cast %28 : vector<1x16x32xf32> to vector<16x32xf32>
      %30 = arith.mulf %27, %27 : vector<16x32xf32>
      %cst_22 = arith.constant dense<0.000000e+00> : vector<16xf32>
      %31 = vector.multi_reduction <add>, %30, %cst_22 [1] : vector<16x32xf32> to vector<16xf32>
      %32 = vector.shape_cast %31 : vector<16xf32> to vector<16x1xf32>
      %cst_23 = arith.constant 1.000000e-24 : f32
      %33 = vector.broadcast %cst_23 : f32 to vector<16x1xf32>
      %34 = arith.maximumf %32, %33 : vector<16x1xf32>
      %35 = math.rsqrt %34 : vector<16x1xf32>
      %36 = vector.broadcast %35 : vector<16x1xf32> to vector<16x32xf32>
      %37 = arith.mulf %27, %36 : vector<16x32xf32>
      %38 = arith.mulf %29, %29 : vector<16x32xf32>
      %cst_24 = arith.constant dense<0.000000e+00> : vector<16xf32>
      %39 = vector.multi_reduction <add>, %38, %cst_24 [1] : vector<16x32xf32> to vector<16xf32>
      %40 = vector.shape_cast %39 : vector<16xf32> to vector<16x1xf32>
      %cst_25 = arith.constant 1.000000e-24 : f32
      %41 = vector.broadcast %cst_25 : f32 to vector<16x1xf32>
      %42 = arith.maximumf %40, %41 : vector<16x1xf32>
      %43 = math.rsqrt %42 : vector<16x1xf32>
      %44 = vector.broadcast %43 : vector<16x1xf32> to vector<16x32xf32>
      %45 = arith.mulf %29, %44 : vector<16x32xf32>
      %cst_26 = arith.constant 14.2857141 : f32
      %46 = vector.broadcast %cst_26 : f32 to vector<16x32xf32>
      %47 = arith.mulf %37, %46 : vector<16x32xf32>
      %48 = arith.mulf %47, %45 : vector<16x32xf32>
      %cst_27 = arith.constant dense<0.000000e+00> : vector<16xf32>
      %49 = vector.multi_reduction <add>, %48, %cst_27 [1] : vector<16x32xf32> to vector<16xf32>
      %50 = vector.shape_cast %49 : vector<16xf32> to vector<16x1xf32>
      %51 = arith.truncf %47 : vector<16x32xf32> to vector<16x32xbf16>
      %c0_28 = arith.constant 0 : index
      %c0_29 = arith.constant 0 : index
      %52 = vector.load %arg6[%c0_28, %c0_29] : memref<16x32xbf16, #tpu.memory_space<vmem>>, vector<16x32xbf16>
      tpu.vector_store %arg6[%c0_28, %c0_29], %51 {strides = array<i32>} : memref<16x32xbf16, #tpu.memory_space<vmem>>, vector<16x32xbf16>,
      %c0_30 = arith.constant 0 : index
      %c0_31 = arith.constant 0 : index
      %53 = vector.load %arg7[%c0_30, %c0_31] : memref<16x1xf32, #tpu.memory_space<vmem>>, vector<16x1xf32>
      tpu.vector_store %arg7[%c0_30, %c0_31], %50 {strides = array<i32>} : memref<16x1xf32, #tpu.memory_space<vmem>>, vector<16x1xf32>,
      %c0_32 = arith.constant 0 : index
      %c0_33 = arith.constant 0 : index
      %54 = vector.load %arg8[%c0_32, %c0_33] : memref<16x1xf32, #tpu.memory_space<vmem>>, vector<16x1xf32>
      tpu.vector_store %arg8[%c0_32, %c0_33], %50 {strides = array<i32>} : memref<16x1xf32, #tpu.memory_space<vmem>>, vector<16x1xf32>,
      %cst_34 = arith.constant 1.000000e+00 : f32
      %55 = vector.broadcast %cst_34 : f32 to vector<16x1xf32>
      %c0_35 = arith.constant 0 : index
      %c0_36 = arith.constant 0 : index
      %56 = vector.load %arg9[%c0_35, %c0_36] : memref<16x1xf32, #tpu.memory_space<vmem>>, vector<16x1xf32>
      tpu.vector_store %arg9[%c0_35, %c0_36], %55 {strides = array<i32>} : memref<16x1xf32, #tpu.memory_space<vmem>>, vector<16x1xf32>,
    } else {
    }
    %c0 = arith.constant 0 : index
    %c0_1 = arith.constant 0 : index
    %3 = vector.load %arg6[%c0, %c0_1] : memref<16x32xbf16, #tpu.memory_space<vmem>>, vector<16x32xbf16>
    %c0_2 = arith.constant 0 : index
    %c0_3 = arith.constant 0 : index
    %c0_4 = arith.constant 0 : index
    %4 = vector.load %arg4[%c0_2, %c0_3, %c0_4] : memref<1x32x128xbf16, #tpu.memory_space<vmem>>, vector<1x32x128xbf16>
    %5 = vector.shape_cast %4 : vector<1x32x128xbf16> to vector<32x128xbf16>
    %cst = arith.constant dense<0.000000e+00> : vector<16x128xf32>
    %6 = tpu.matmul %3, %5, %cst {dimension_numbers = #tpu.dot_dimension_numbers<[1], [0], [0], [1], [0, 0, 1, 1], [], []>} : vector<16x32xbf16>, vector<32x128xbf16>, vector<16x128xf32> -> vector<16x128xf32>
    %c0_5 = arith.constant 0 : index
    %c0_6 = arith.constant 0 : index
    %7 = vector.load %arg8[%c0_5, %c0_6] : memref<16x1xf32, #tpu.memory_space<vmem>>, vector<16x1xf32>
    %cst_7 = arith.constant dense<0xFF800000> : vector<16xf32>
    %8 = vector.multi_reduction <maximumf>, %6, %cst_7 [1] : vector<16x128xf32> to vector<16xf32>
    %9 = vector.shape_cast %8 : vector<16xf32> to vector<16x1xf32>
    %10 = arith.maximumf %7, %9 : vector<16x1xf32>
    %c0_8 = arith.constant 0 : index
    %c0_9 = arith.constant 0 : index
    %11 = vector.load %arg9[%c0_8, %c0_9] : memref<16x1xf32, #tpu.memory_space<vmem>>, vector<16x1xf32>
    %12 = arith.subf %7, %10 : vector<16x1xf32>
    %13 = math.exp %12 : vector<16x1xf32>
    %14 = arith.mulf %11, %13 : vector<16x1xf32>
    %15 = vector.broadcast %10 : vector<16x1xf32> to vector<16x128xf32>
    %16 = arith.subf %6, %15 : vector<16x128xf32>
    %17 = math.exp %16 : vector<16x128xf32>
    %cst_10 = arith.constant dense<0.000000e+00> : vector<16xf32>
    %18 = vector.multi_reduction <add>, %17, %cst_10 [1] : vector<16x128xf32> to vector<16xf32>
    %19 = vector.shape_cast %18 : vector<16xf32> to vector<16x1xf32>
    %20 = arith.addf %14, %19 : vector<16x1xf32>
    %c0_11 = arith.constant 0 : index
    %c0_12 = arith.constant 0 : index
    %21 = vector.load %arg9[%c0_11, %c0_12] : memref<16x1xf32, #tpu.memory_space<vmem>>, vector<16x1xf32>
    tpu.vector_store %arg9[%c0_11, %c0_12], %20 {strides = array<i32>} : memref<16x1xf32, #tpu.memory_space<vmem>>, vector<16x1xf32>,
    %c0_13 = arith.constant 0 : index
    %c0_14 = arith.constant 0 : index
    %22 = vector.load %arg8[%c0_13, %c0_14] : memref<16x1xf32, #tpu.memory_space<vmem>>, vector<16x1xf32>
    tpu.vector_store %arg8[%c0_13, %c0_14], %10 {strides = array<i32>} : memref<16x1xf32, #tpu.memory_space<vmem>>, vector<16x1xf32>,
    %c2_i32 = arith.constant 2 : i32
    %23 = arith.cmpi eq, %arg1, %c2_i32 : i32
    %24 = arith.extui %23 : i1 to i32
    %c0_i32_15 = arith.constant 0 : i32
    %25 = arith.cmpi ne, %24, %c0_i32_15 : i32
    scf.if %25 {
      %c0_16 = arith.constant 0 : index
      %c0_17 = arith.constant 0 : index
      %26 = vector.load %arg9[%c0_16, %c0_17] : memref<16x1xf32, #tpu.memory_space<vmem>>, vector<16x1xf32>
      %27 = math.log %26 : vector<16x1xf32>
      %c0_18 = arith.constant 0 : index
      %c0_19 = arith.constant 0 : index
      %28 = vector.load %arg8[%c0_18, %c0_19] : memref<16x1xf32, #tpu.memory_space<vmem>>, vector<16x1xf32>
      %29 = arith.addf %27, %28 : vector<16x1xf32>
      %c0_20 = arith.constant 0 : index
      %c0_21 = arith.constant 0 : index
      %30 = vector.load %arg7[%c0_20, %c0_21] : memref<16x1xf32, #tpu.memory_space<vmem>>, vector<16x1xf32>
      %31 = arith.subf %29, %30 : vector<16x1xf32>
      %32 = tpu.iota {dimensions = array<i32: 0>} : vector<8x128xi32>
      %cst_22 = arith.constant 0.000000e+00 : f32
      %33 = vector.broadcast %cst_22 : f32 to vector<8x128xf32>
      %34 = vector.extract_strided_slice %31 {offsets = [0, 0], sizes = [8, 1], strides = [1, 1]} : vector<16x1xf32> to vector<8x1xf32>
      %35 = vector.shape_cast %34 : vector<8x1xf32> to vector<1x8x1xf32>
      %cst_23 = arith.constant dense<0.000000e+00> : vector<1xf32>
      %36 = vector.multi_reduction <add>, %35, %cst_23 [1, 2] : vector<1x8x1xf32> to vector<1xf32>
      %37 = vector.shape_cast %36 : vector<1xf32> to vector<1x1x1xf32>
      %38 = vector.extract %37[0, 0, 0] : f32 from vector<1x1x1xf32>
      %cst_24 = arith.constant 1.250000e-01 : f32
      %39 = arith.mulf %38, %cst_24 : f32
      %c0_i32_25 = arith.constant 0 : i32
      %40 = vector.broadcast %c0_i32_25 : i32 to vector<8x128xi32>
      %41 = arith.cmpi eq, %32, %40 : vector<8x128xi32>
      %42 = vector.broadcast %39 : f32 to vector<8x128xf32>
      %43 = arith.select %41, %42, %33 : vector<8x128xi1>, vector<8x128xf32>
      %44 = vector.extract_strided_slice %31 {offsets = [8, 0], sizes = [8, 1], strides = [1, 1]} : vector<16x1xf32> to vector<8x1xf32>
      %45 = vector.shape_cast %44 : vector<8x1xf32> to vector<1x8x1xf32>
      %cst_26 = arith.constant dense<0.000000e+00> : vector<1xf32>
      %46 = vector.multi_reduction <add>, %45, %cst_26 [1, 2] : vector<1x8x1xf32> to vector<1xf32>
      %47 = vector.shape_cast %46 : vector<1xf32> to vector<1x1x1xf32>
      %48 = vector.extract %47[0, 0, 0] : f32 from vector<1x1x1xf32>
      %cst_27 = arith.constant 1.250000e-01 : f32
      %49 = arith.mulf %48, %cst_27 : f32
      %c1_i32 = arith.constant 1 : i32
      %50 = vector.broadcast %c1_i32 : i32 to vector<8x128xi32>
      %51 = arith.cmpi eq, %32, %50 : vector<8x128xi32>
      %52 = vector.broadcast %49 : f32 to vector<8x128xf32>
      %53 = arith.select %51, %52, %43 : vector<8x128xi1>, vector<8x128xf32>
      %c0_28 = arith.constant 0 : index
      %c0_29 = arith.constant 0 : index
      %c0_30 = arith.constant 0 : index
      %54 = vector.load %arg5[%c0_28, %c0_29, %c0_30] : memref<1x8x128xf32, #tpu.memory_space<vmem>>, vector<1x8x128xf32>
      %55 = vector.shape_cast %54 : vector<1x8x128xf32> to vector<8x128xf32>
      %56 = vector.shape_cast %53 : vector<8x128xf32> to vector<1x8x128xf32>
      tpu.vector_store %arg5[%c0_28, %c0_29, %c0_30], %56 {strides = array<i32>} : memref<1x8x128xf32, #tpu.memory_space<vmem>>, vector<1x8x128xf32>,
    } else {
    }
    return
  }
  func.func @transform_0(%arg0: i32, %arg1: i32) -> (i32, i32, i32) {
    %c0_i32 = arith.constant 0 : i32
    %c0_i32_0 = arith.constant 0 : i32
    %c0_i32_1 = arith.constant 0 : i32
    return %arg0, %c0_i32, %c0_i32_0 : i32, i32, i32
  }
  func.func @transform_1(%arg0: i32, %arg1: i32) -> (i32, i32, i32) {
    %c0_i32 = arith.constant 0 : i32
    %c0_i32_0 = arith.constant 0 : i32
    %c0_i32_1 = arith.constant 0 : i32
    return %arg0, %c0_i32, %c0_i32_0 : i32, i32, i32
  }
  func.func @transform_2(%arg0: i32, %arg1: i32) -> (i32, i32, i32) {
    %c0_i32 = arith.constant 0 : i32
    %c0_i32_0 = arith.constant 0 : i32
    return %arg0, %c0_i32, %arg1 : i32, i32, i32
  }
  func.func @transform_3(%arg0: i32, %arg1: i32) -> (i32, i32, i32) {
    %c0_i32 = arith.constant 0 : i32
    %c0_i32_0 = arith.constant 0 : i32
    %c0_i32_1 = arith.constant 0 : i32
    return %arg0, %c0_i32, %c0_i32_0 : i32, i32, i32
  }
}

</mosaic_0001>

<bundles_post_ra>
// kernel: tpu_custom_call.1
= control target key start
LH: loop header
LB: loop body
LE: loop exit
PB: predicated region body
PF: predicated region fallthrough
CT: control target
= control target key end

     0   :  { %s1389_s0 = inlined_call_operand.hbm [shape: f32[2,16,32], index: 0, kind: input, shape index: {}]   ;;  %s1390_s1 = inlined_call_operand.hbm [shape: f32[2,16,32], index: 1, kind: input, shape index: {}]   ;;  %s1391_s2 = inlined_call_operand.hbm [shape: bf16[2,32,384], index: 2, kind: input, shape index: {}]   ;;  %s1392_s3 = inlined_call_operand.hbm [shape: f32[2,8,128], index: 3, kind: output, shape index: {}]  }
   0x1   :  { %1405 = sst [smem:[#allocation24_spill]] %s1389_s0 }
   0x2   :  { %1406 = sst [smem:[#allocation25_spill]] %s1390_s1 }
   0x3   :  { %1407 = sst [smem:[#allocation26_spill]] %s1392_s3 }
   0x4   :  { %8 = vsyncpa [#allocation7], 0 }
   0x5   :  { %10 = vsyncpa [#allocation7 + $0x1], 0 }
   0x6   :  { %11 = vsyncpa [#allocation10], 0 }
   0x7   :  { %13 = vsyncpa [#allocation10 + $0x1], 0 }
   0x8   :  { %14 = vsyncpa [#allocation8], 0 }
   0x9   :  { %16 = vsyncpa [#allocation8 + $0x1], 0  ;;  %s1091_s12 = smov 0   ;;  %s1093_s13 = smov 0  }
   0xa   :  { %s1095_s14 = smov 0   ;;  %s1097_s15 = smov 0  }
   0xb   :  { %s1099_s16 = smov 0   ;;  %s1101_s17 = smov 0  }
   0xc   :  { %s1103_s18 = smov 0   ;;  %s1105_s19 = smov 0  }
   0xd   :  { %s1107_s20 = smov 0   ;;  %s1109_s21 = smov 0  }
   0xe   :  { %s1111_s22 = smov 0  }
   0xf LB: > { %1408 = sst [smem:[#allocation17_spill]] %s1028_s15  ;;  %s1147_s23 = sadd.s32 4294967295, %s1056_s22   ;;  %s1056_s22 = sphi %s1111_s22, %s22_s22   ;;  %s1052_s21 = sphi %s1109_s21, %s1450_s21   ;;  %s1048_s20 = sphi %s1107_s20, %s1449_s20   ;;  %s1044_s19 = sphi %s1105_s19, %s1448_s19   ;;  %s1040_s18 = sphi %s1103_s18, %s1447_s18   ;;  %s1036_s17 = sphi %s1101_s17, %s1446_s17   ;;  %s1032_s16 = sphi %s1099_s16, %s1445_s16   ;;  %s1028_s15 = sphi %s1097_s15, %s1444_s15   ;;  %s1024_s14 = sphi %s1095_s14, %s1443_s14   ;;  %s1020_s13 = sphi %s1093_s13, %s1442_s13   ;;  %s1016_s12 = sphi %s1091_s12, %s1441_s12  }
  0x10   : > { %1409 = sst [smem:[#allocation18_spill]] %s1040_s18  ;;  %s650_s24 = sadd.s32 4294967294, %s1056_s22  }
  0x11   : > { %1410 = sst [smem:[#allocation19_spill]] %s1044_s19  ;;  %p48_p0 = scmp.ne.s32.totalorder %s1036_s17, %s1032_s16 }
  0x12   : > { %p49_p1 = scmp.eq.s32.totalorder %s1056_s22, 0  ;;  %p54_p2 = scmp.ne.s32.totalorder %s1032_s16, %s1028_s15 }
  0x13   : > { %p1397_p3 = scmp.eq.s32.totalorder %s1147_s23, 0  ;;  %p132_p5 = scmp.eq.s32.totalorder %s1147_s23, 5 }
  0x14   : > { %p50_p4 = por %p49_p1, %p48_p0  ;;  %p138_p7 = scmp.eq.s32.totalorder %s650_s24, 5 }
  0x15   : > { %p1163_p6 = por %p1397_p3, %p54_p2  ;;  %p1167_p8 = por %p132_p5, %p48_p0 }
  0x16   : > { %p1171_p9 = por %p138_p7, %p54_p2  ;;  %p1396_p10 = scmp.lt.s32.totalorder %s1056_s22, 6 }
  0x17   : > { %s1412_s28 = scalar_select %p1167_p8, 1, 0 }
  0x18   : > { %s1414_s29 = scalar_select %p1171_p9, 1, 0 }
  0x19   : > { %1413 = sst [smem:[#allocation20_spill]] %s1412_s28  ;;  %s1393_s30 = sand.u32 1, %s1036_s17  }
  0x1a   : > { %1415 = sst [smem:[#allocation21_spill]] %s1414_s29  ;;  %s678_s4 = sshll.u32 %s1052_s21, 8 }
  0x1b   : > { %s1180_s5 = sshll.u32 %s1393_s30, 4  ;;  %p1184_p11 = pnand %p1396_p10, %p50_p4 }
  0x1c   : > { %s179_s7 = sand.u32 1, %s1056_s22   ;;  %s1417_s1 = sld [smem:[#allocation25_spill]] }
  0x1d   : > { %s183_s11 = scalar_lea.vmem [#allocation9], %s1180_s5  ;;  %p661_p12 = scmp.ge.s32.totalorder %s1056_s22, 1 }
  0x1e   : > { %s190_s24 = sshll.u32 %s183_s11, 4  ;;  %s1196_s26 = scalar_lea.sflag [#allocation10], %s179_s7  ;;  %s191_s24 = int_to_ptr.vmem [resolvable:$true] %s190_s24 }
  0x1f   : > { %p846_p13 = pneg %p1184_p11  ;;  %s857_s25 = scalar_lea.vmem %s191_s24, 256 }
  0x20   : > { %p858_p0 = scmp.ne.s32.totalorder %s191_s24, %s857_s25  ;;  %s1058_s30 = smov [#allocation9]  }
  0x21   : > { %s862_s29 = sshll.u32 %s1058_s30, 4  ;;  %s863_s29 = int_to_ptr.vmem [resolvable:$false] %s862_s29 }
  0x22   : > { %s189_s10 = scalar_lea.hbm %s1417_s1, %s678_s4  ;;  %p860_p2 = pnand %p858_p0, %p846_p13 }
  0x23   : > { %s864_s15 = scalar_lea.vmem %s863_s29, 512  ;;  %p865_p5 = scmp.lt.s32.totalorder %s191_s24, %s863_s29 }
  0x24   : > { %p861_p4 = pneg %p860_p2  ;;  %p866_p7 = scmp.lt.s32.totalorder %s864_s15, %s857_s25 }
  0x26   : > { %p867_p10 = por %p866_p7, %p865_p5 }
  0x28   : > { %p868_p3 = pnand %p867_p10, %p861_p4 }
  0x2a   : > { %871 = shalt.err (!%p868_p3)
}
  0x2b   : > { %s1059_s8 = smov 128   ;;  %s1060_s7 = smov 8  }
  0x2c   : > { %712 = dma.hbm_to_vmem [thread:$0]  (!%p1184_p11), %s189_s10, 256, %s191_s24, %s1196_s26, %s1059_s8, %s1059_s8, %s1060_s7  }
  0x2d   : > { %p220_p0 = scmp.lt.s32.totalorder %s1056_s22, 7  ;;  %s1419_s0 = sld [smem:[#allocation24_spill]] }
  0x2e   : > { %s162_s9 = scalar_lea.vmem [#allocation6], %s1180_s5  ;;  %s1420_s1 = sand.u32 1, %s1036_s17  }
  0x2f   : > { %p1209_p2 = pnand %p661_p12, %p220_p0  ;;  %s169_s11 = sshll.u32 %s162_s9, 4  ;;  %s170_s11 = int_to_ptr.vmem [resolvable:$true] %s169_s11 }
  0x30   : > { %s159_s3 = scalar_lea.sflag [#allocation7], %s1420_s1  ;;  %s885_s28 = scalar_lea.vmem %s170_s11, 256 }
  0x31   : > { %p886_p3 = scmp.ne.s32.totalorder %s170_s11, %s885_s28  ;;  %s1061_s10 = smov [#allocation6]  }
  0x32   : > { %s890_s24 = sshll.u32 %s1061_s10, 4  ;;  %s891_s24 = int_to_ptr.vmem [resolvable:$false] %s890_s24 }
  0x33   : > { %s168_s30 = scalar_lea.hbm %s1419_s0, %s678_s4  ;;  %p888_p10 = pnand %p886_p3, %p846_p13 }
  0x34   : > { %s892_s19 = scalar_lea.vmem %s891_s24, 512  ;;  %p893_p12 = scmp.lt.s32.totalorder %s170_s11, %s891_s24 }
  0x35   : > { %p889_p4 = pneg %p888_p10  ;;  %p894_p5 = scmp.lt.s32.totalorder %s892_s19, %s885_s28 }
  0x37   : > { %p895_p7 = por %p894_p5, %p893_p12 }
  0x39   : > { %p896_p0 = pnand %p895_p7, %p889_p4 }
  0x3b   : > { %899 = shalt.err (!%p896_p0)
}
  0x3c   : > { %709 = dma.hbm_to_vmem [thread:$0]  (!%p1184_p11), %s168_s30, 256, %s170_s11, %s159_s3, %s1059_s8, %s1059_s8, %s1060_s7  }
  0x3d   : > { %s31_s1 = sadd.s32 1, %s1048_s20  ;;  %s95_s19 = sadd.s32 1, %s1024_s14 }
  0x3e   : > { %p32_p13 = scmp.ge.s32.totalorder %s31_s1, 3  ;;  %p102_p3 = scmp.ne.s32.totalorder %s1024_s14, %s1020_s13 }
  0x3f   : > { %p108_p10 = scmp.ne.s32.totalorder %s1020_s13, %s1016_s12  ;;  %s1422_s28 = sadd.s32 1, %s1052_s21 }
  0x40   : > { %s1452_s1 = smov (%p32_p13, %s31_s1), 0  ;;  %s1454_s28 = smov (!%p32_p13, %s1422_s28), %s1052_s21 }
  0x41   : > { %1421 = sst [smem:[#allocation22_spill]] %s1452_s1  ;;  %s91_s4 = ssub.s32 %s1048_s20, %s1452_s1 }
  0x42   : > { %p1241_p4 = por %p102_p3, %p49_p1  ;;  %p36_p11 = scmp.ge.s32.totalorder %s1454_s28, 2 }
  0x43   : > { %p1424_p12 = scmp.eq.s32.totalorder %s1147_s23, 0  ;;  %s202_s12 = sand.u32 1, %s1024_s14  }
  0x44   : > { %s693_s6 = smul.u32 12, %s1052_s21  ;;  %s1456_s28 = smov (%p36_p11, %s1454_s28), 0 }
  0x45   : > { %p1247_p5 = por %p108_p10, %p1424_p12  ;;  %s659_s8 = sshll.u32 %s202_s12, 4 }
  0x46   : > { %s209_s7 = sadd.s32 %s1048_s20, %s693_s6  ;;  %s38_s15 = ssub.s32 %s1052_s21, %s1456_s28 }
  0x47   : > { %s1425_s3 = scalar_select %p1247_p5, 1, 0 }
  0x48   : > { %p39_p1 = scmp.eq.s32.totalorder %s38_s15, 0  ;;  %s92_s25 = sor.u32 %s91_s4, %s38_s15 }
  0x49   : > { %1426 = sst [smem:[#allocation23_spill]] %s1425_s3  ;;  %p93_p7 = scmp.eq.s32.totalorder %s92_s25, 0 }
  0x4a   : > { %s660_s30 = sshll.u32 %s209_s7, 6  ;;  %s1427_s9 = sadd.s32 1, %s1036_s17 }
  0x4b   : > { %s1261_s11 = scalar_select %p39_p1, %s1036_s17, %s1427_s9  }
  0x4c   : > { %s1264_s10 = scalar_select %p93_p7, %s1024_s14, %s95_s19  }
  0x4d   : > { %s211_s1 = scalar_lea.hbm %s1391_s2, %s660_s30  ;;  %s204_s18 = scalar_lea.vmem [#allocation11], %s659_s8 }
  0x4e   : > { %s212_s3 = sshll.u32 %s204_s18, 4  ;;  %p1428_p0 = scmp.lt.s32.totalorder %s1056_s22, 6  ;;  %s213_s3 = int_to_ptr.vmem [resolvable:$true] %s212_s3 }
  0x4f   : > { %s913_s4 = scalar_lea.vmem %s213_s3, 256  ;;  %s1062_s19 = smov [#allocation11]  }
  0x50   : > { %p1273_p13 = pnand %p1428_p0, %p1241_p4  ;;  %p914_p10 = scmp.ne.s32.totalorder %s213_s3, %s913_s4 }
  0x51   : > { %s918_s6 = sshll.u32 %s1062_s19, 4  ;;  %s919_s6 = int_to_ptr.vmem [resolvable:$false] %s918_s6 }
  0x52   : > { %p902_p3 = pneg %p1273_p13  ;;  %s920_s0 = scalar_lea.vmem %s919_s6, 512 }
  0x53   : > { %p921_p1 = scmp.lt.s32.totalorder %s213_s3, %s919_s6  ;;  %p922_p7 = scmp.lt.s32.totalorder %s920_s0, %s913_s4 }
  0x54   : > { %p916_p11 = pnand %p914_p10, %p902_p3 }
  0x55   : > { %p923_p9 = por %p922_p7, %p921_p1 }
  0x56   : > { %p917_p12 = pneg %p916_p11 }
  0x58   : > { %p924_p8 = pnand %p923_p9, %p917_p12 }
  0x5a   : > { %927 = shalt.err (!%p924_p8)
}
  0x5b   : > { %s1063_s18 = smov 192   ;;  %s1064_s5 = smov 64  }
  0x5c   : > { %s1065_s8 = smov 4   ;;  %224 = sbr.rel (%p1209_p2) target bundleno = 1315 (0x523), region = 32 }
  0x5d   : > { %715 = dma.hbm_to_vmem [thread:$0]  (!%p1273_p13), %s211_s1, 256, %s213_s3, %s1196_s26, %s1063_s18, %s1064_s5, %s1065_s8  }
  0x5e   : > { %s1285_s7 = sand.u32 (!%p1209_p2), 1, %s1032_s16  }
  0x5f   : > { %s662_s15 = sshll.u32 (!%p1209_p2), %s1285_s7, 4  ;;  %s227_s25 = scalar_lea.sflag (!%p1209_p2), [#allocation7], %s1285_s7 }
  0x60   : > { %s230_s30 = scalar_lea.vmem (!%p1209_p2), [#allocation6], %s662_s15 }
  0x61   : > { %999 = dma.done.wait (%p1163_p6), %s227_s25, 256  }
  0x62   : > { %1001 = vsyncadd (%p1163_p6), %s227_s25, 4294967040  ;;  %s235_s26 = sand.u32 1, %s1147_s23   ;;  %s239_s29 = scalar_lea.vmem [#allocation9], %s662_s15 }
  0x63   : > { %s236_s1 = scalar_lea.sflag [#allocation10], %s235_s26 }
  0x64   : > { %1003 = dma.done.wait (%p1163_p6), %s236_s1, 256  }
  0x65   : > { %1005 = vsyncadd (%p1163_p6), %s236_s1, 4294967040  ;;  %s246_s9 = sand.u32 1, %s1020_s13  }
  0x66   : > { %s1299_s24 = sshll.u32 %s246_s9, 4 }
  0x67   : > { %s248_s12 = scalar_lea.vmem [#allocation11], %s1299_s24 }
  0x68   : > { %1007 = dma.done.wait (%p1247_p5), %s236_s1, 256  }
  0x69   : > { %1009 = vsyncadd (%p1247_p5), %s236_s1, 4294967040  ;;  %s665_s23 = sshll.u32 %s1285_s7, 3  ;;  %s1431_s19 = sld [smem:[#allocation18_spill]] }
  0x6a   : > { %s1307_s4 = scalar_lea.vmem [#allocation12], %s665_s23 }
  0x6f   : > { %p666_p8 = scmp.ne.s32.totalorder %s1431_s19, 0 }
  0x71   : > { %285 = sbr.rel (%p666_p8) target bundleno = 426 (0x1aa), region = 48 }
  0x76   : > { %v286_v0 = vld [vmem:[%s230_s30] sm:$0xff]  ;;  %vm292_vm0 = vcmask 261120   ;;  %v287_v2 = vld [vmem:[%s230_s30 + $0x8] sm:$0xff]  ;;  %vm340_vm1 = vcmask 7168   ;;  %v1066_v12 = vmov 1.0   ;;  %vm337_vm2 = vcmask 257024  }
  0x77   : > { %v288_v1 = vld [vmem:[%s239_s29] sm:$0xff]  ;;  %v290_v3 = vmul.f32 %v286_v0, %v286_v0  ;;  %v291_v5 = vmul.f32 %v287_v2, %v287_v2  ;;  %v289_v6 = vld [vmem:[%s239_s29 + $0x8] sm:$0xff]  ;;  %345 = vst.msk [vmem:[#allocation5] sm:$0xff] %vm340_vm1, %v1066_v12  ;;  %346 = vst.msk [vmem:[#allocation5 + $0x8] sm:$0xff] %vm340_vm1, %v1066_v12 }
  0x78   : > { %v305_v4 = vmul.f32 %v288_v1, %v288_v1  ;;  %v306_v7 = vmul.f32 %v289_v6, %v289_v6 }
  0x79   : > { %v293_v8 = vsel %vm292_vm0, %v290_v3, 0.0  ;;  %v296_v10 = vsel %vm292_vm0, %v291_v5, 0.0 }
  0x7a   : > { %v307_v9 = vsel %vm292_vm0, %v305_v4, 0.0  ;;  %294 = vadd.xlane.f32.xlu0 %v293_v8  ;;  %v310_v11 = vsel %vm292_vm0, %v306_v7, 0.0 }
  0x7b   : > { %308 = vadd.xlane.f32.xlu1 %v307_v9 }
  0x7e   : > { %297 = vadd.xlane.f32.xlu0 %v296_v10 }
  0x7f   : > { %311 = vadd.xlane.f32.xlu1 %v310_v11 }
 0x103   : > { %v295_v13 = vpop.xlane.xlu0 %294 }
 0x104   : > { %v309_v14 = vpop.xlane.xlu1 %308  ;;  %v299_v15 = vmax.f32 %v295_v13, 1e-24 }
 0x105   : > { %v313_v16 = vmax.f32 %v309_v14, 1e-24 }
 0x106   : > { %819 = vrsqrt.f32 %v299_v15 }
 0x107   : > { %821 = vrsqrt.f32 %v313_v16  ;;  %v298_v17 = vpop.xlane.xlu0 %297 }
 0x108   : > { %v312_v18 = vpop.xlane.xlu1 %311  ;;  %v300_v19 = vmax.f32 %v298_v17, 1e-24 }
 0x109   : > { %v314_v20 = vmax.f32 %v312_v18, 1e-24 }
 0x10a   : > { %823 = vrsqrt.f32 %v300_v19 }
 0x10b   : > { %825 = vrsqrt.f32 %v314_v20 }
 0x113   : > { %v820_v21 = vpop.eup %819 }
 0x114   : > { %v822_v22 = vpop.eup %821  ;;  %v303_v23 = vmul.f32 %v820_v21, %v286_v0 }
 0x115   : > { %v317_v24 = vmul.f32 %v822_v22, %v288_v1 }
 0x116   : > { %v319_v25 = vmul.f32 14.285714, %v303_v23 }
 0x117   : > { %v824_v26 = vpop.eup %823 }
 0x118   : > { %v826_v27 = vpop.eup %825  ;;  %v321_v28 = vmul.f32 %v319_v25, %v317_v24  ;;  %v680_v29 = vpack.c.bf16 %v319_v25, %v319_v25  ;;  %v304_v30 = vmul.f32 %v824_v26, %v287_v2 }
 0x119   : > { %v318_v31 = vmul.f32 %v826_v27, %v289_v6 }
 0x11a   : > { %v323_v32 = vsel %vm292_vm0, %v321_v28, 0.0  ;;  %338 = vst.msk [vmem:[#allocation2] sm:$0xf] %vm337_vm2, %v680_v29  ;;  %v320_v33 = vmul.f32 14.285714, %v304_v30 }
 0x11b   : > { %324 = vadd.xlane.f32.xlu0 %v323_v32 }
 0x11c   : > { %v322_v34 = vmul.f32 %v320_v33, %v318_v31  ;;  %v681_v35 = vpack.c.bf16 %v320_v33, %v320_v33 }
 0x11e   : > { %v326_v36 = vsel %vm292_vm0, %v322_v34, 0.0  ;;  %339 = vst.msk [vmem:[#allocation2 + $0x4] sm:$0xf] %vm337_vm2, %v681_v35 }
 0x11f   : > { %327 = vadd.xlane.f32.xlu1 %v326_v36 }
 0x1a4   : > { %v325_v37 = vpop.xlane.xlu0 %324 }
 0x1a5   : > { %341 = vst.msk [vmem:[#allocation3] sm:$0xff] %vm340_vm1, %v325_v37  ;;  %343 = vst.msk [vmem:[#allocation4] sm:$0xff] %vm340_vm1, %v325_v37 }
 0x1a8   : > { %v328_v38 = vpop.xlane.xlu1 %327 }
 0x1a9   : > { %342 = vst.msk [vmem:[#allocation3 + $0x8] sm:$0xff] %vm340_vm1, %v328_v38  ;;  %344 = vst.msk [vmem:[#allocation4 + $0x8] sm:$0xff] %vm340_vm1, %v328_v38 }
 0x1aa PF: > { %v829_v39 = vld [vmem:[%s248_s12 + $0x8] sm:$0xff]   ;;  %v1067_v40 = vmov 0.0   ;;  %v830_v41 = vld [vmem:[%s248_s12] sm:$0xff]   ;;  %vm1068_vm3 = vmmov 0   ;;  %vm370_vm4 = vcmask 261120   ;;  %v1069_v47 = vmov 0  }
 0x1ab   : > { %685 = vmatprep.subr.bf16.mxu0 %v1067_v40  ;;  %689 = vmatprep.mubr.msk.bf16.mxu0 %vm1068_vm3, %v1067_v40  ;;  %v831_v42 = vld [vmem:[#allocation2] sm:$0xff]   ;;  %vm455_vm5 = vcmask 7168   ;;  %v423_v3 = vld [vmem:[#allocation5] sm:$0xff]  ;;  %v424_v7 = vld [vmem:[#allocation5 + $0x8] sm:$0xff]  ;;  %s1432_s27 = sld [smem:[#allocation18_spill]] }
 0x1ac   : > { %686 = vmatpush3.bf16.msra.mxu0 %v829_v39  ;;  %827 = vset.pattern.permute.xlu1 %v1069_v47  ;;  %v415_v48 = vld [vmem:[#allocation4] sm:$0xff] }
 0x1ad   : > { %687 = vmatprep.subr.bf16.mxu0 %v1067_v40  ;;  %828 = vset.pattern.permute.xlu0 %v1069_v47 }
 0x1b0   : > { %688 = vmatpush3.bf16.msra.mxu0 %v830_v41  ;;  %v416_v51 = vld [vmem:[#allocation4 + $0x8] sm:$0xff] }
 0x1b1   : > { %p673_p6 = scmp.ne.s32.totalorder %s1432_s27, 2 }
 0x1b3   : > { %690 = vmatmul.mubr.msk.bf16.vlgmr.msra.gmra.mxu0 %vm370_vm4, %v831_v42 }
 0x273   : > { %v408_v43 = vpop.f32.mrf.mxu0 }
 0x274   : > { %417 = vmax.xlane.f32.xlu0 %v408_v43 }
 0x275   : > { %v691_v44 = vpop.f32.mrf.mxu0 }
 0x277   : > { %v411_v45 = vpop.f32.mrf.mxu0 }
 0x278   : > { %419 = vmax.xlane.f32.xlu0 %v411_v45 }
 0x279   : > { %v692_v46 = vpop.f32.mrf.mxu0 }
 0x2fd   : > { %v418_v49 = vpop.xlane.xlu0 %417 }
 0x2fe   : > { %v421_v50 = vmax.f32 %v415_v48, %v418_v49 }
 0x300   : > { %v425_v52 = vsub.f32 %v415_v48, %v421_v50  ;;  %458 = vst.msk [vmem:[#allocation4] sm:$0xff] %vm455_vm5, %v421_v50  ;;  %435 = vperm.xlu1 %827, %v421_v50  }
 0x301   : > { %v420_v53 = vpop.xlane.xlu0 %419 }
 0x302   : > { %v422_v54 = vmax.f32 %v416_v51, %v420_v53  ;;  %v427_v0 = vmul.f32 1.442695, %v425_v52 }
 0x304   : > { %v426_v55 = vsub.f32 %v416_v51, %v422_v54  ;;  %459 = vst.msk [vmem:[#allocation4 + $0x8] sm:$0xff] %vm455_vm5, %v422_v54  ;;  %440 = vperm.xlu1 %827, %v422_v54  }
 0x306   : > { %v429_v1 = vmul.f32 1.442695, %v426_v55 }
 0x37b   : > { %v436_v56 = vpop.permute.xlu1 %435 }
 0x37c   : > { %v443_v57 = vsub.f32 %v408_v43, %v436_v56 }
 0x37e   : > { %v445_v58 = vmul.f32 1.442695, %v443_v57 }
 0x37f   : > { %v441_v59 = vpop.permute.xlu1 %440 }
 0x380   : > { %832 = vpow2.f32 %v445_v58  ;;  %v444_v60 = vsub.f32 %v411_v45, %v441_v59 }
 0x382   : > { %v447_v61 = vmul.f32 1.442695, %v444_v60 }
 0x384   : > { %834 = vpow2.f32 %v447_v61 }
 0x385   : > { %836 = vpow2.f32 %v427_v0 }
 0x386   : > { %838 = vpow2.f32 %v429_v1 }
 0x38d   : > { %v833_v62 = vpop.eup %832 }
 0x38e   : > { %449 = vadd.xlane.f32.xlu0 %v833_v62 }
 0x391   : > { %v835_v63 = vpop.eup %834 }
 0x392   : > { %451 = vadd.xlane.f32.xlu1 %v835_v63  ;;  %v837_v2 = vpop.eup %836 }
 0x393   : > { %v431_v4 = vmul.f32 %v837_v2, %v423_v3  ;;  %v839_v5 = vpop.eup %838 }
 0x394   : > { %v432_v9 = vmul.f32 %v839_v5, %v424_v7 }
 0x417   : > { %v450_v6 = vpop.xlane.xlu0 %449 }
 0x418   : > { %v453_v8 = vadd.f32 %v450_v6, %v431_v4 }
 0x41a   : > { %456 = vst.msk [vmem:[#allocation5] sm:$0xff] %vm455_vm5, %v453_v8  ;;  %463 = sbr.rel (%p673_p6) target bundleno = 1288 (0x508), region = 52 }
 0x41b   : > { %v452_v10 = vpop.xlane.xlu1 %451 }
 0x41c   : > { %v454_v11 = vadd.f32 %v452_v10, %v432_v9 }
 0x41e   : > { %457 = vst.msk [vmem:[#allocation5 + $0x8] sm:$0xff] %vm455_vm5, %v454_v11 }
 0x41f   : > { %v470_v15 = vld [vmem:[#allocation4] sm:$0xff]  ;;  %v471_v18 = vld [vmem:[#allocation4 + $0x8] sm:$0xff]  ;;  %v474_v19 = vld [vmem:[#allocation3] sm:$0xff]  ;;  %v478_v42 = vlaneseq }
 0x420   : > { %v475_v22 = vld [vmem:[#allocation3 + $0x8] sm:$0xff] }
 0x421   : > { %v464_v12 = vld [vmem:[#allocation5] sm:$0xff]  ;;  %v479_v43 = vshrl.u32 %v478_v42, 7 }
 0x422   : > { %840 = vlog2.f32 %v464_v12 }
 0x423   : > { %vm491_vm6 = vcmp.eq.s32.totalorder %v479_v43, 0  ;;  %vm505_vm7 = vcmp.eq.s32.totalorder %v479_v43, 1 }
 0x425   : > { %v465_v13 = vld [vmem:[#allocation5 + $0x8] sm:$0xff] }
 0x426   : > { %842 = vlog2.f32 %v465_v13 }
 0x42f   : > { %v841_v14 = vpop.eup %840 }
 0x430   : > { %v467_v17 = vmul.f32 0.6931472, %v841_v14 }
 0x432   : > { %v472_v21 = vadd.f32 %v470_v15, %v467_v17 }
 0x433   : > { %v843_v16 = vpop.eup %842 }
 0x434   : > { %v469_v20 = vmul.f32 0.6931472, %v843_v16  ;;  %v476_v24 = vsub.f32 %v472_v21, %v474_v19 }
 0x436   : > { %v473_v23 = vadd.f32 %v471_v18, %v469_v20  ;;  %v480_v26 = vsel %vm455_vm5, %v476_v24, 0.0 }
 0x437   : > { %481 = vadd.xlane.f32.xlu0 %v480_v26 }
 0x438   : > { %v477_v25 = vsub.f32 %v473_v23, %v475_v22 }
 0x43a   : > { %v494_v27 = vsel %vm455_vm5, %v477_v25, 0.0 }
 0x43b   : > { %495 = vadd.xlane.f32.xlu0 %v494_v27 }
 0x4c0   : > { %v482_v28 = vpop.xlane.xlu0 %481 }
 0x4c1   : > { %v483_v29 = vrot.slane %v482_v28, 4 }
 0x4c3   : > { %v484_v30 = vadd.f32 %v483_v29, %v482_v28 }
 0x4c4   : > { %v496_v31 = vpop.xlane.xlu0 %495 }
 0x4c5   : > { %v485_v32 = vrot.slane %v484_v30, 2  ;;  %v497_v33 = vrot.slane %v496_v31, 4 }
 0x4c7   : > { %v498_v34 = vadd.f32 %v497_v33, %v496_v31  ;;  %v486_v35 = vadd.f32 %v485_v32, %v484_v30 }
 0x4c9   : > { %v499_v36 = vrot.slane %v498_v34, 2  ;;  %v487_v37 = vrot.slane %v486_v35, 1 }
 0x4cb   : > { %v500_v38 = vadd.f32 %v499_v36, %v498_v34  ;;  %v488_v39 = vadd.f32 %v487_v37, %v486_v35 }
 0x4cd   : > { %694 = vpush %v488_v39  ;;  %v501_v40 = vrot.slane %v500_v38, 1 }
 0x4cf   : > { %v502_v41 = vadd.f32 %v501_v40, %v500_v38 }
 0x4d1   : > { %696 = vpush %v502_v41 }
 0x4fe   : > { %s695_s6 = spop %694 }
 0x4ff   : > { %s490_s0 = smul.f32 0.125, %s695_s6 }
 0x501   : > { %v492_v44 = vstv %s490_s0 }
 0x502   : > { %s697_s18 = spop %696  ;;  %v493_v45 = vsel %vm491_vm6, %v492_v44, 0.0 }
 0x503   : > { %s504_s5 = smul.f32 0.125, %s697_s18 }
 0x505   : > { %v506_v46 = vstv %s504_s5 }
 0x506   : > { %v507_v47 = vsel %vm505_vm7, %v506_v46, %v493_v45 }
 0x507   : > { %508 = vst [vmem:[%s1307_s4] sm:$0xff] %v507_v47 }
 0x508 PF: > { %s1433_s8 = sld [smem:[#allocation19_spill]]  ;;  %s523_s3 = sshll.u32 %s1307_s4, 4  ;;  %s524_s3 = int_to_ptr.vmem [resolvable:$true] %s523_s3 }
 0x509   : > { %s1434_s15 = sld [smem:[#allocation20_spill]]  ;;  %s510_s9 = scalar_lea.sflag [#allocation8], %s1285_s7 }
 0x50a   : > { %s1435_s1 = sld [smem:[#allocation26_spill]]  ;;  %s928_s24 = scalar_lea.vmem %s524_s3, 128 }
 0x50b   : > { %p929_p9 = scmp.ne.s32.totalorder %s524_s3, %s928_s24  ;;  %s1070_s12 = smov [#allocation12]  }
 0x50c   : > { %s932_s23 = sshll.u32 %s1070_s12, 4  ;;  %s933_s23 = int_to_ptr.vmem [resolvable:$false] %s932_s23 }
 0x50d   : > { %s934_s19 = scalar_lea.vmem %s933_s23, 256  ;;  %p935_p0 = scmp.lt.s32.totalorder %s524_s3, %s933_s23 }
 0x50e   : > { %s675_s25 = sshll.u32 %s1433_s8, 7  ;;  %p936_p13 = scmp.lt.s32.totalorder %s934_s19, %s928_s24 }
 0x50f   : > { %p1436_p2 = scmp.ne.s32.totalorder %s1434_s15, 0 }
 0x510   : > { %s521_s29 = scalar_lea.hbm %s1435_s1, %s675_s25  ;;  %p937_p3 = por %p936_p13, %p935_p0 }
 0x511   : > { %p930_p4 = pnand %p929_p9, %p1436_p2 }
 0x513   : > { %p931_p5 = pneg %p930_p4 }
 0x515   : > { %p938_p10 = pnand %p937_p3, %p931_p5 }
 0x517   : > { %941 = shalt.err (!%p938_p10)
}
 0x518   : > { %s942_s27 = scalar_lea.hbm %s521_s29, 128  ;;  %s946_s6 = scalar_lea.hbm %s1435_s1, 256 }
 0x519   : > { %p943_p11 = scmp.ne.s32.totalorder %s521_s29, %s942_s27  ;;  %p947_p7 = scmp.lt.s32.totalorder %s521_s29, %s1435_s1 }
 0x51a   : > { %p948_p8 = scmp.lt.s32.totalorder %s946_s6, %s942_s27 }
 0x51b   : > { %p944_p12 = pnand %p943_p11, %p1436_p2 }
 0x51c   : > { %p949_p6 = por %p948_p8, %p947_p7 }
 0x51d   : > { %p945_p1 = pneg %p944_p12 }
 0x51f   : > { %p950_p9 = pnand %p949_p6, %p945_p1 }
 0x521   : > { %953 = shalt.err (!%p950_p9)
}
 0x522   : > { %704 = dma.vmem_to_hbm [thread:$0]  (%p1436_p2), %s524_s3, 128, %s521_s29, %s510_s9  }
 0x523 PF: > { %s1437_s5 = sld [smem:[#allocation17_spill]]  ;;  %p721_p4 = scmp.ge.s32.totalorder %s1056_s22, 2 }
 0x524   : > { %s1438_s8 = sld [smem:[#allocation21_spill]] }
 0x529   : > { %s535_s25 = sand.u32 1, %s1437_s5  }
 0x52a   : > { %p1439_p5 = scmp.ne.s32.totalorder %s1438_s8, 0  ;;  %s536_s30 = scalar_lea.sflag [#allocation8], %s535_s25 }
 0x52c   : > { %p717_p0 = pnand %p721_p4, %p1439_p5 }
 0x52e   : > { %p718_p13 = pneg %p717_p0 }
 0x530   : > { %1011 = dma.done.wait (%p718_p13), %s536_s30, 128  }
 0x531   : > { %1013 = vsyncadd (%p718_p13), %s536_s30, 4294967168  ;;  %s22_s22 = sadd.s32 1, %s1056_s22   ;;  %s1440_s26 = sld [smem:[#allocation22_spill]] }
 0x532   : > { %p19_p3 = scmp.ge.s32.totalorder %s22_s22, 8   ;;  %s1441_s12 = smov %s1020_s13 }
 0x533   : > { %s1442_s13 = smov %s1024_s14  ;;  %s1443_s14 = smov %s1264_s10 }
 0x534   : > { %s1444_s15 = smov %s1032_s16  ;;  %s1445_s16 = smov %s1036_s17 }
 0x535   : > { %s1446_s17 = smov %s1261_s11  ;;  %s1447_s18 = smov %s1048_s20 }
 0x536   : > { %s1448_s19 = smov %s1052_s21  ;;  %s1450_s21 = smov %s1456_s28 }
 0x537   : > { %s1449_s20 = smov %s1440_s26  ;;  %21 = sbr.rel (!%p19_p3) target bundleno = 15 (0xf), region = 109 }
 0x53c   :  { %541 = vsyncpa [#allocation7], 1 }
 0x53d   :  { %543 = vsyncpa [#allocation7 + $0x1], 1 }
 0x53e   :  { %544 = vsyncpa [#allocation10], 1 }
 0x53f   :  { %546 = vsyncpa [#allocation10 + $0x1], 1 }
 0x540   :  { %547 = vsyncpa [#allocation8], 1 }
 0x541   :  { %549 = vsyncpa [#allocation8 + $0x1], 1 }

</bundles_post_ra>
